<compile_context>
chip_gen: v6e
topology: v6e:2x2x1
jax: 0.10.0
libtpu: 0.0.40
codegen_flags: <defaults>
</compile_context>

<pallas_src>
import jax
import jax.numpy as jnp
from jax.experimental import pallas as pl
from jax.experimental.pallas import tpu as pltpu


def _round_up(x, m):
    return ((x + m - 1) // m) * m


# ---------------------------------------------------------------------------
# Generation-aware knobs
# ---------------------------------------------------------------------------

def _vmem_capacity_bytes():
    """Physical VMEM per TensorCore; conservative 64 MiB fallback."""
    try:
        cap = getattr(pltpu.get_tpu_info(), "vmem_capacity_bytes", None)
        if cap:
            return int(cap)
    except Exception:
        pass
    return 64 << 20


def _vmem_budget_bytes(capacity):
    # Leave compiler-internal headroom: ~105 MiB on 128-MiB parts (v5e/v6e),
    # ~52 MiB on 64-MiB parts (v7x).
    return int(capacity * 0.82)


def _default_token_tile(capacity):
    # Bigger token tiles on 128-MiB parts; smaller on v7x (64 MiB).
    return 512 if capacity >= (96 << 20) else 256


def _token_axis_semantics(num_token_steps):
    """CORE_PARALLEL on v7x (2 TCs/chip) so the second core isn't idle; plain
    "parallel" on single-TC generations or when there is only one token tile."""
    if num_token_steps >= 2:
        try:
            kind = jax.devices()[0].device_kind.lower()
        except Exception:
            kind = ""
        if ("v7" in kind) or ("7x" in kind):
            cp = getattr(pltpu, "CORE_PARALLEL", None)
            if cp is not None:
                return cp
    return "parallel"


def _pick_tile(full, fits):
    """Largest multiple of 128 that divides `full` and satisfies fits(tile)."""
    n = full // 128
    for d in range(n, 0, -1):
        if n % d == 0 and fits(128 * d):
            return 128 * d
    # Nothing fits the budget even at 128; fall back (comment-only corner case:
    # would additionally require shrinking the token tile).
    return 128


# ---------------------------------------------------------------------------
# One-time parameter preparation (hoisted out of the per-call path)
# ---------------------------------------------------------------------------

def prepare_ffn_params(w1, b1, w2, b2, *, fuse=True, compute_dtype=jnp.bfloat16):
    """Pad/cast (and optionally algebraically fuse) the FFN parameters once.

    Weights are pre-transposed: w1 (D, F), b1 (F,), w2 (F, D), b2 (D,), so the
    forward pass is  relu((x @ w1 + b1) @ w2 + b2)  -- matching nn.Linear.
    """
    model_dim, ff_dim = w1.shape
    Dp = _round_up(model_dim, 128)
    Fp = _round_up(ff_dim, 128)

    if fuse:
        # No nonlinearity between fc1 and fc2 -> collapse the two linears.
        # Composition done in f32; single bf16 cast for the MXU afterwards.
        wf = jnp.dot(w1.astype(jnp.float32), w2.astype(jnp.float32))
        bf = jnp.dot(b1.astype(jnp.float32), w2.astype(jnp.float32)) + b2.astype(jnp.float32)
        wf = jnp.pad(wf, ((0, Dp - model_dim), (0, Dp - model_dim))).astype(compute_dtype)
        bf = jnp.pad(bf, (0, Dp - model_dim)).reshape(1, Dp).astype(jnp.float32)
        return dict(fused=True, model_dim=model_dim, ff_dim=ff_dim,
                    compute_dtype=compute_dtype, wf=wf, bf=bf)

    w1p = jnp.pad(w1, ((0, Dp - model_dim), (0, Fp - ff_dim))).astype(compute_dtype)
    w2p = jnp.pad(w2, ((0, Fp - ff_dim), (0, Dp - model_dim))).astype(compute_dtype)
    b1p = jnp.pad(b1, (0, Fp - ff_dim)).reshape(1, Fp).astype(jnp.float32)
    b2p = jnp.pad(b2, (0, Dp - model_dim)).reshape(1, Dp).astype(jnp.float32)
    return dict(fused=False, model_dim=model_dim, ff_dim=ff_dim,
                compute_dtype=compute_dtype, w1=w1p, b1=b1p, w2=w2p, b2=b2p)


# ---------------------------------------------------------------------------
# Kernels
# ---------------------------------------------------------------------------

def _fused_kernel(x_ref, w_ref, b_ref, o_ref):
    # out = relu(x @ Wf + bf): single MXU GEMM, f32 accumulate, ReLU in f32.
    y = jnp.dot(x_ref[...], w_ref[...], preferred_element_type=jnp.float32) + b_ref[...]
    o_ref[...] = jnp.maximum(y, 0.0).astype(o_ref.dtype)


def _twogemm_kernel(x_ref, w1_ref, b1_ref, w2_ref, b2_ref, o_ref, acc_ref):
    # F-tiled reduction:  acc += (x @ w1[:, f] + b1[f]) @ w2[f, :]
    f = pl.program_id(1)

    @pl.when(f == 0)
    def _init():
        acc_ref[...] = jnp.zeros_like(acc_ref)

    h = jnp.dot(x_ref[...], w1_ref[...], preferred_element_type=jnp.float32) + b1_ref[...]
    acc_ref[...] += jnp.dot(h.astype(w2_ref.dtype), w2_ref[...],
                            preferred_element_type=jnp.float32)

    @pl.when(f == pl.num_programs(1) - 1)
    def _finalize():
        o_ref[...] = jnp.maximum(acc_ref[...] + b2_ref[...], 0.0).astype(o_ref.dtype)


# ---------------------------------------------------------------------------
# Wrapper
# ---------------------------------------------------------------------------

def feed_forward_block(x, params, *, token_tile=None):
    """Apply relu(fc2(fc1(x))) with parameters from prepare_ffn_params."""
    batch, seq, model_dim = x.shape
    assert model_dim == params["model_dim"]
    compute_dtype = params["compute_dtype"]
    out_dtype = x.dtype
    itemsize = jnp.dtype(compute_dtype).itemsize
    osize = jnp.dtype(out_dtype).itemsize

    M = batch * seq
    Dp = _round_up(model_dim, 128)
    Fp = _round_up(params["ff_dim"], 128)

    capacity = _vmem_capacity_bytes()
    budget = _vmem_budget_bytes(capacity)
    tm = token_tile if token_tile is not None else _default_token_tile(capacity)
    # bf16 native sublane tile is (16, 128): keep TM a multiple of 16.
    TM = min(_round_up(tm, 16), _round_up(M, 16))
    Mp = _round_up(M, TM)

    x2d = x.reshape(M, model_dim)
    if Mp != M or Dp != model_dim:                  # skip pad when aligned
        x2d = jnp.pad(x2d, ((0, Mp - M), (0, Dp - model_dim)))
    x2d = x2d.astype(compute_dtype)

    n_token = Mp // TM
    token_sem = _token_axis_semantics(n_token)

    if params["fused"]:
        # Pick the widest lane-dense output tile TN whose working set fits.
        def _fits(tn):
            need = (2 * TM * Dp * itemsize          # x tile (double-buffered)
                    + 2 * Dp * tn * itemsize        # Wf tile
                    + 2 * tn * 4                    # bf tile
                    + 2 * TM * tn * osize           # out tile
                    + TM * tn * 4)                  # live f32 result
            return need <= budget
        TN = _pick_tile(Dp, _fits)
        grid = (n_token, Dp // TN)

        cost = pl.CostEstimate(
            flops=2 * Mp * Dp * Dp,
            transcendentals=0,
            bytes_accessed=(Mp * Dp * itemsize + Dp * Dp * itemsize
                            + Dp * 4 + Mp * Dp * osize))

        out2d = pl.pallas_call(
            _fused_kernel,
            out_shape=jax.ShapeDtypeStruct((Mp, Dp), out_dtype),
            grid_spec=pltpu.PrefetchScalarGridSpec(
                num_scalar_prefetch=0,
                grid=grid,
                in_specs=[
                    pl.BlockSpec((TM, Dp), lambda i, j: (i, 0)),   # x (pipelined)
                    pl.BlockSpec((Dp, TN), lambda i, j: (0, j)),   # Wf (resident/streamed)
                    pl.BlockSpec((1, TN), lambda i, j: (0, j)),    # bf
                ],
                out_specs=pl.BlockSpec((TM, TN), lambda i, j: (i, j)),
            ),
            compiler_params=pltpu.CompilerParams(
                dimension_semantics=(token_sem, "arbitrary"),
                vmem_limit_bytes=budget),
            cost_estimate=cost,
        )(x2d, params["wf"], params["bf"])
    else:
        # Two-GEMM path with the F (reduction) axis tiled: w1/w2 streamed per
        # F-tile so resident weight never has to fit VMEM in one piece.
        def _fits(tf):
            need = (2 * TM * Dp * itemsize          # x tile
                    + 2 * Dp * tf * itemsize        # w1 tile
                    + 2 * tf * 4                    # b1 tile
                    + 2 * tf * Dp * itemsize        # w2 tile
                    + 2 * Dp * 4                    # b2
                    + 2 * TM * Dp * osize           # out tile
                    + TM * Dp * 4                   # f32 accumulator scratch
                    + TM * tf * (4 + itemsize))     # live h (f32 + bf16 copy)
            return need <= budget
        TF = _pick_tile(Fp, _fits)
        grid = (n_token, Fp // TF)

        cost = pl.CostEstimate(
            flops=2 * Mp * Dp * Fp + 2 * Mp * Fp * Dp,
            transcendentals=0,
            bytes_accessed=(Mp * Dp * itemsize + 2 * Dp * Fp * itemsize
                            + (Fp + Dp) * 4 + Mp * Dp * osize))

        out2d = pl.pallas_call(
            _twogemm_kernel,
            out_shape=jax.ShapeDtypeStruct((Mp, Dp), out_dtype),
            grid_spec=pltpu.PrefetchScalarGridSpec(
                num_scalar_prefetch=0,
                grid=grid,
                in_specs=[
                    pl.BlockSpec((TM, Dp), lambda i, f: (i, 0)),   # x (pipelined)
                    pl.BlockSpec((Dp, TF), lambda i, f: (0, f)),   # w1 (F-streamed)
                    pl.BlockSpec((1, TF), lambda i, f: (0, f)),    # b1
                    pl.BlockSpec((TF, Dp), lambda i, f: (f, 0)),   # w2 (F-streamed)
                    pl.BlockSpec((1, Dp), lambda i, f: (0, 0)),    # b2 (resident)
                ],
                out_specs=pl.BlockSpec((TM, Dp), lambda i, f: (i, 0)),
                scratch_shapes=[pltpu.VMEM((TM, Dp), jnp.float32)],
            ),
            compiler_params=pltpu.CompilerParams(
                dimension_semantics=(token_sem, "arbitrary"),
                vmem_limit_bytes=budget),
            cost_estimate=cost,
        )(x2d, params["w1"], params["b1"], params["w2"], params["b2"])

    if Mp != M or Dp != model_dim:
        out2d = out2d[:M, :model_dim]
    return out2d.reshape(batch, seq, model_dim)


def _ref_forward(x, w1, b1, w2, b2):
    # Pure-JAX f32 reference matching PyTorch semantics: relu(fc2(fc1(x)))
    h = x @ w1 + b1
    y = h @ w2 + b2
    return jnp.maximum(y, 0.0)


if __name__ == "__main__":
    batch, seq = 2, 8
    model_dim, ff_dim = 32, 64

    key = jax.random.PRNGKey(0)
    kx, kw1, kb1, kw2, kb2 = jax.random.split(key, 5)

    x = jax.random.normal(kx, (batch, seq, model_dim), dtype=jnp.float32)

    # Deterministic init mimicking torch.nn.Linear: U(-1/sqrt(in), 1/sqrt(in)).
    lim1 = 1.0 / (model_dim ** 0.5)
    lim2 = 1.0 / (ff_dim ** 0.5)
    # Stored pre-transposed as (in_dim, out_dim).
    w1 = jax.random.uniform(kw1, (model_dim, ff_dim), jnp.float32, -lim1, lim1)
    b1 = jax.random.uniform(kb1, (ff_dim,), jnp.float32, -lim1, lim1)
    w2 = jax.random.uniform(kw2, (ff_dim, model_dim), jnp.float32, -lim2, lim2)
    b2 = jax.random.uniform(kb2, (model_dim,), jnp.float32, -lim2, lim2)

    ref = _ref_forward(x, w1, b1, w2, b2)

    # Fused single-GEMM path (default; fc1/fc2 collapse is exact in math).
    fused_params = prepare_ffn_params(w1, b1, w2, b2, fuse=True)
    out_fused = jax.block_until_ready(feed_forward_block(x, fused_params))

    # Two-GEMM, F-tiled path (kept for when the factored weights are required).
    unfused_params = prepare_ffn_params(w1, b1, w2, b2, fuse=False)
    out_unfused = jax.block_until_ready(feed_forward_block(x, unfused_params))

    assert out_fused.shape == (batch, seq, model_dim)
    assert out_unfused.shape == (batch, seq, model_dim)
    # bf16 MXU operands with f32 accumulation -> loosened tolerance vs f32 ref.
    assert jnp.allclose(out_fused, ref, atol=3e-2, rtol=3e-2), "fused mismatch"
    assert jnp.allclose(out_unfused, ref, atol=3e-2, rtol=3e-2), "two-GEMM mismatch"

    print("KERNEL_OK")
</pallas_src>

<mosaic_0001>
module attributes {stable_mosaic.version = 11 : i64} {
  func.func @_fused_kernel(%arg0: i32, %arg1: i32, %arg2: memref<16x128xbf16, #tpu.memory_space<vmem>>, %arg3: memref<128x128xbf16, #tpu.memory_space<vmem>>, %arg4: memref<1x128xf32, #tpu.memory_space<vmem>>, %arg5: memref<16x128xf32, #tpu.memory_space<vmem>>) attributes {dimension_semantics = [#tpu.dimension_semantics<parallel>, #tpu.dimension_semantics<arbitrary>], iteration_bounds = array<i64: 1, 1>, scalar_prefetch = 0 : i64, scratch_operands = 0 : i64, tpu.core_type = #tpu.core_type<tc>, window_params = [{transform_indices = @transform_0, window_bounds = array<i64: 16, 128>}, {transform_indices = @transform_1, window_bounds = array<i64: 128, 128>}, {transform_indices = @transform_2, window_bounds = array<i64: 1, 128>}, {transform_indices = @transform_3, window_bounds = array<i64: 16, 128>}]} {
    %c0 = arith.constant 0 : index
    %c0_0 = arith.constant 0 : index
    %0 = vector.load %arg2[%c0, %c0_0] : memref<16x128xbf16, #tpu.memory_space<vmem>>, vector<16x128xbf16>
    %c0_1 = arith.constant 0 : index
    %c0_2 = arith.constant 0 : index
    %1 = vector.load %arg3[%c0_1, %c0_2] : memref<128x128xbf16, #tpu.memory_space<vmem>>, vector<128x128xbf16>
    %cst = arith.constant dense<0.000000e+00> : vector<16x128xf32>
    %2 = tpu.matmul %0, %1, %cst {dimension_numbers = #tpu.dot_dimension_numbers<[1], [0], [0], [1], [0, 0, 1, 1], [], []>} : vector<16x128xbf16>, vector<128x128xbf16>, vector<16x128xf32> -> vector<16x128xf32>
    %c0_3 = arith.constant 0 : index
    %c0_4 = arith.constant 0 : index
    %3 = vector.load %arg4[%c0_3, %c0_4] : memref<1x128xf32, #tpu.memory_space<vmem>>, vector<1x128xf32>
    %4 = vector.broadcast %3 : vector<1x128xf32> to vector<16x128xf32>
    %5 = arith.addf %2, %4 : vector<16x128xf32>
    %cst_5 = arith.constant 0.000000e+00 : f32
    %6 = vector.broadcast %cst_5 : f32 to vector<16x128xf32>
    %7 = arith.maximumf %5, %6 : vector<16x128xf32>
    %c0_6 = arith.constant 0 : index
    %c0_7 = arith.constant 0 : index
    %8 = vector.load %arg5[%c0_6, %c0_7] : memref<16x128xf32, #tpu.memory_space<vmem>>, vector<16x128xf32>
    tpu.vector_store %arg5[%c0_6, %c0_7], %7 {strides = array<i32>} : memref<16x128xf32, #tpu.memory_space<vmem>>, vector<16x128xf32>,
    return
  }
  func.func @transform_0(%arg0: i32, %arg1: i32) -> (i32, i32) {
    %c0_i32 = arith.constant 0 : i32
    %c0_i32_0 = arith.constant 0 : i32
    return %arg0, %c0_i32 : i32, i32
  }
  func.func @transform_1(%arg0: i32, %arg1: i32) -> (i32, i32) {
    %c0_i32 = arith.constant 0 : i32
    %c0_i32_0 = arith.constant 0 : i32
    return %c0_i32, %arg1 : i32, i32
  }
  func.func @transform_2(%arg0: i32, %arg1: i32) -> (i32, i32) {
    %c0_i32 = arith.constant 0 : i32
    %c0_i32_0 = arith.constant 0 : i32
    return %c0_i32, %arg1 : i32, i32
  }
  func.func @transform_3(%arg0: i32, %arg1: i32) -> (i32, i32) {
    %c0_i32 = arith.constant 0 : i32
    return %arg0, %arg1 : i32, i32
  }
}

</mosaic_0001>

<bundles_post_ra>
// kernel: tpu_custom_call.1
= control target key start
LH: loop header
LB: loop body
LE: loop exit
PB: predicated region body
PF: predicated region fallthrough
CT: control target
= control target key end

     0   :  { %8 = vsyncpa [#allocation3], 0  ;;  %s350_s0 = inlined_call_operand.hbm [shape: bf16[16,128], index: 0, kind: input, shape index: {}]   ;;  %s351_s1 = inlined_call_operand.hbm [shape: bf16[128,128], index: 1, kind: input, shape index: {}]   ;;  %s352_s2 = inlined_call_operand.vmem [shape: f32[1,128], index: 2, kind: input, shape index: {}]   ;;  %s353_s3 = inlined_call_operand.hbm [shape: f32[16,128], index: 3, kind: output, shape index: {}]  }
   0x1   :  { %9 = vsyncpa [#allocation6], 0 }
   0x2   :  { %10 = vsyncpa [#allocation4], 0  ;;  %s309_s12 = smov [#allocation2]  }
   0x3   :  { %s16_s13 = sshll.u32 %s309_s12, 4  ;;  %s17_s13 = int_to_ptr.vmem [resolvable:$true] %s16_s13 }
   0x4   :  { %s251_s14 = scalar_lea.vmem %s17_s13, 128  ;;  %p256_p1 = scmp.lt.s32.totalorder %s17_s13, %s17_s13 }
   0x5   :  { %p252_p0 = scmp.ne.s32.totalorder %s17_s13, %s251_s14  ;;  %p257_p2 = scmp.lt.s32.totalorder %s251_s14, %s251_s14 }
   0x7   :  { %p258_p3 = por %p257_p2, %p256_p1 }
   0x9   :  { %p259_p4 = pnand %p258_p3, %p252_p0 }
   0xb   :  { %262 = shalt.err (!%p259_p4)
}
   0xc   :  { %s310_s15 = smov 64   ;;  %s311_s16 = smov 4  }
   0xd   :  { %22 = dma.hbm_to_vmem [thread:$0]  %s350_s0, 128, %s17_s13, [#allocation3], %s310_s15, %s310_s15, %s311_s16  }
   0xe   :  { %s312_s19 = smov [#allocation5]  }
   0xf   :  { %s28_s20 = sshll.u32 %s312_s19, 4  ;;  %s29_s20 = int_to_ptr.vmem [resolvable:$true] %s28_s20 }
  0x10   :  { %s271_s21 = scalar_lea.vmem %s29_s20, 1024  ;;  %p276_p6 = scmp.lt.s32.totalorder %s29_s20, %s29_s20 }
  0x11   :  { %p272_p5 = scmp.ne.s32.totalorder %s29_s20, %s271_s21  ;;  %p277_p7 = scmp.lt.s32.totalorder %s271_s21, %s271_s21 }
  0x13   :  { %p278_p8 = por %p277_p7, %p276_p6 }
  0x15   :  { %p279_p9 = pnand %p278_p8, %p272_p5 }
  0x17   :  { %282 = shalt.err (!%p279_p9)
}
  0x18   :  { %34 = dma.hbm_to_vmem [thread:$0]  %s351_s1, 1024, %s29_s20, [#allocation6], %s310_s15, %s310_s15, %s311_s16  }
  0x19   :  { %303 = dma.done.wait [#allocation3], 128  }
  0x1a   :  { %304 = vsyncadd [#allocation3], 4294967168 }
  0x1b   :  { %305 = dma.done.wait [#allocation6], 1024  }
  0x1c   :  { %306 = vsyncadd [#allocation6], 4294966272  ;;  %v313_v0 = vmov 0.0   ;;  %vm314_vm0 = vmmov 0   ;;  %v234_v1 = vld [vmem:[#allocation5 + $0x38] sm:$0xff]   ;;  %v235_v2 = vld [vmem:[#allocation5 + $0x30] sm:$0xff]  }
  0x1d   :  { %205 = vmatprep.subr.bf16.mxu0 %v313_v0  ;;  %221 = vmatprep.mubr.msk.bf16.mxu0 %vm314_vm0, %v313_v0  ;;  %v236_v3 = vld [vmem:[#allocation5 + $0x28] sm:$0xff]   ;;  %v237_v4 = vld [vmem:[#allocation5 + $0x20] sm:$0xff]   ;;  %v238_v5 = vld [vmem:[#allocation5 + $0x18] sm:$0xff]   ;;  %s315_s24 = smov [#allocation7]  }
  0x1e   :  { %206 = vmatpush3.bf16.msra.mxu0 %v234_v1  ;;  %v239_v6 = vld [vmem:[#allocation5 + $0x10] sm:$0xff]   ;;  %v240_v7 = vld [vmem:[#allocation5 + $0x8] sm:$0xff]   ;;  %v241_v8 = vld [vmem:[#allocation5] sm:$0xff]   ;;  %s173_s25 = sshll.u32 %s315_s24, 4  ;;  %s174_s25 = int_to_ptr.vmem [resolvable:$true] %s173_s25 }
  0x1f   :  { %207 = vmatprep.subr.bf16.mxu0 %v313_v0  ;;  %v242_v9 = vld [vmem:[#allocation2] sm:$0xff]   ;;  %s283_s26 = scalar_lea.vmem %s174_s25, 256  ;;  %p288_p11 = scmp.lt.s32.totalorder %s174_s25, %s174_s25 }
  0x20   :  { %v186_v10 = vld [vmem:[%s352_s2] ss:$0 sm:$0xff]  ;;  %p284_p10 = scmp.ne.s32.totalorder %s174_s25, %s283_s26  ;;  %p289_p12 = scmp.lt.s32.totalorder %s283_s26, %s283_s26 }
  0x22   :  { %208 = vmatpush3.bf16.msra.mxu0 %v235_v2  ;;  %p290_p13 = por %p289_p12, %p288_p11 }
  0x23   :  { %209 = vmatprep.subr.bf16.mxu0 %v313_v0 }
  0x24   :  { %p291_p0 = pnand %p290_p13, %p284_p10 }
  0x26   :  { %210 = vmatpush3.bf16.msra.mxu0 %v236_v3 }
  0x27   :  { %211 = vmatprep.subr.bf16.mxu0 %v313_v0 }
  0x2a   :  { %212 = vmatpush3.bf16.msra.mxu0 %v237_v4 }
  0x2b   :  { %213 = vmatprep.subr.bf16.mxu0 %v313_v0 }
  0x2e   :  { %214 = vmatpush3.bf16.msra.mxu0 %v238_v5 }
  0x2f   :  { %215 = vmatprep.subr.bf16.mxu0 %v313_v0 }
  0x32   :  { %216 = vmatpush3.bf16.msra.mxu0 %v239_v6 }
  0x33   :  { %217 = vmatprep.subr.bf16.mxu0 %v313_v0 }
  0x36   :  { %218 = vmatpush3.bf16.msra.mxu0 %v240_v7 }
  0x37   :  { %219 = vmatprep.subr.bf16.mxu0 %v313_v0 }
  0x3a   :  { %220 = vmatpush3.bf16.msra.mxu0 %v241_v8 }
  0x3d   :  { %222 = vmatmul.mubr.bf16.vlgmr.msra.gmra.mxu0 %v242_v9 }
  0xfd   :  { %v157_v11 = vpop.f32.mrf.mxu0 }
  0xfe   :  { %v158_v12 = vadd.f32 %v186_v10, %v157_v11 }
  0xff   :  { %v223_v13 = vpop.f32.mrf.mxu0 }
 0x100   :  { %v164_v14 = vmax.f32 %v158_v12, 0.0 }
 0x101   :  { %v160_v15 = vpop.f32.mrf.mxu0 }
 0x102   :  { %166 = vst [vmem:[#allocation7] sm:$0xff] %v164_v14  ;;  %v161_v16 = vadd.f32 %v186_v10, %v160_v15 }
 0x103   :  { %v224_v17 = vpop.f32.mrf.mxu0 }
 0x104   :  { %v165_v18 = vmax.f32 %v161_v16, 0.0 }
 0x106   :  { %167 = vst [vmem:[#allocation7 + $0x8] sm:$0xff] %v165_v18 }
 0x107   :  { %294 = shalt.err (!%p291_p0)
}
 0x108   :  { %s316_s2 = smov 128   ;;  %s317_s27 = smov 8  }
 0x109   :  { %179 = dma.vmem_to_hbm [thread:$0]  %s174_s25, 256, %s353_s3, [#allocation4], %s316_s2, %s316_s2, %s317_s27  }
 0x10a   :  { %307 = dma.done.wait [#allocation4], 256  }
 0x10b   :  { %308 = vsyncadd [#allocation4], 4294967040 }
 0x10c   :  { %183 = vsyncpa [#allocation3], 1 }
 0x10d   :  { %184 = vsyncpa [#allocation6], 1 }
 0x10e   :  { %185 = vsyncpa [#allocation4], 1 }

</bundles_post_ra>
